<compile_context>
chip_gen: v5e
topology: v5e:2x2
jax: 0.10.0
libtpu: 0.0.40
codegen_flags: <defaults>
</compile_context>

<pallas_src>
import jax
import jax.numpy as jnp
from jax.experimental import pallas as pl
from jax.experimental.pallas import tpu as pltpu


def _eeg_chung_kernel(x_ref, wih_ref, whh_ref, b_ref, wfc_ref, bfc_ref,
                      out_ref, gx_scr, h_all_scr):
    T, B, D = x_ref.shape
    H = whh_ref.shape[0]
    O = wfc_ref.shape[1]

    # --- (1) All-timestep input path: off the serial recurrence. ----------
    x_flat = x_ref[...].reshape(T * B, D)
    gx = jnp.dot(x_flat, wih_ref[...],
                 preferred_element_type=jnp.float32) + b_ref[...]
    gx_scr[...] = gx.reshape(T, B, 4 * H)

    # --- (2) Serial recurrence: only h_{t-1} @ W_hh^T per step. -----------
    def step(t, carry):
        h_prev, c_prev = carry
        gates = gx_scr[t] + jnp.dot(h_prev, whh_ref[...],
                                    preferred_element_type=jnp.float32)
        # Gate columns are pre-permuted to [i | f | o | g].
        sig = jax.nn.sigmoid(gates[:, :3 * H])
        i_g = sig[:, 0 * H:1 * H]
        f_g = sig[:, 1 * H:2 * H]
        o_g = sig[:, 2 * H:3 * H]
        g_g = jnp.tanh(gates[:, 3 * H:])
        c_new = f_g * c_prev + i_g * g_g
        h_new = o_g * jnp.tanh(c_new)
        h_all_scr[t] = h_new
        return (h_new, c_new)

    zeros = jnp.zeros((B, H), jnp.float32)   # PyTorch default zero h0/c0
    jax.lax.fori_loop(0, T, step, (zeros, zeros), unroll=True)

    # --- (3) Batched fc projection + single writeback. --------------------
    h_all = h_all_scr[...].reshape(T * B, H)
    out = jnp.dot(h_all, wfc_ref[...],
                  preferred_element_type=jnp.float32) + bfc_ref[...]
    out_ref[...] = out.reshape(T, B, O).astype(out_ref.dtype)


@jax.jit
def eeg_chung_forward(x, w_ih, w_hh, b_ih, b_hh, w_fc, b_fc):
    """x: (T, B, D) float32.  Returns (T, B, O) float32.

    Weight layouts follow PyTorch nn.LSTM / nn.Linear:
      w_ih: (4H, D) rows [i; f; g; o], w_hh: (4H, H), b_ih/b_hh: (4H,),
      w_fc: (O, H), b_fc: (O,).
    """
    T, B, D = x.shape
    H = w_ih.shape[0] // 4
    O = w_fc.shape[0]

    # Glue: permute gate blocks [i,f,g,o] -> [i,f,o,g] and pre-transpose so
    # the kernel does plain (M,K)@(K,N) matmuls.
    perm = jnp.concatenate([jnp.arange(0 * H, 2 * H),      # i, f
                            jnp.arange(3 * H, 4 * H),      # o
                            jnp.arange(2 * H, 3 * H)])     # g
    wih_t = w_ih[perm].T                         # (D, 4H), cols [i,f,o,g]
    whh_t = w_hh[perm].T                         # (H, 4H)
    b = (b_ih + b_hh)[perm].reshape(1, 4 * H)    # (1, 4H)
    wfc_t = w_fc.T                               # (H, O)
    bfc = b_fc.reshape(1, O)                     # (1, O)

    grid_spec = pltpu.PrefetchScalarGridSpec(
        num_scalar_prefetch=0,
        grid=(1,),                               # single invocation
        in_specs=[
            pl.BlockSpec((T, B, D), lambda i: (0, 0, 0)),     # x (whole)
            pl.BlockSpec((D, 4 * H), lambda i: (0, 0)),       # W_ih^T
            pl.BlockSpec((H, 4 * H), lambda i: (0, 0)),       # W_hh^T
            pl.BlockSpec((1, 4 * H), lambda i: (0, 0)),       # bias
            pl.BlockSpec((H, O), lambda i: (0, 0)),           # W_fc^T
            pl.BlockSpec((1, O), lambda i: (0, 0)),           # b_fc
        ],
        out_specs=pl.BlockSpec((T, B, O), lambda i: (0, 0, 0)),
        scratch_shapes=[
            pltpu.VMEM((T, B, 4 * H), jnp.float32),   # precomputed x-gates
            pltpu.VMEM((T, B, H), jnp.float32),       # all hidden states
        ],
    )

    return pl.pallas_call(
        _eeg_chung_kernel,
        out_shape=jax.ShapeDtypeStruct((T, B, O), jnp.float32),
        grid_spec=grid_spec,
        compiler_params=pltpu.CompilerParams(
            dimension_semantics=("arbitrary",)),
    )(x, wih_t, whh_t, b, wfc_t, bfc)


def _reference_forward(x, w_ih, w_hh, b_ih, b_hh, w_fc, b_fc):
    """Pure-JAX reference (mirrors PyTorch nn.LSTM + nn.Linear)."""
    T, B, D = x.shape
    H = w_hh.shape[1]

    def step(carry, x_t):
        h, c = carry
        gates = x_t @ w_ih.T + h @ w_hh.T + b_ih + b_hh
        i = jax.nn.sigmoid(gates[:, 0 * H:1 * H])
        f = jax.nn.sigmoid(gates[:, 1 * H:2 * H])
        g = jnp.tanh(gates[:, 2 * H:3 * H])
        o = jax.nn.sigmoid(gates[:, 3 * H:4 * H])
        c = f * c + i * g
        h = o * jnp.tanh(c)
        return (h, c), h

    init = (jnp.zeros((B, H), jnp.float32), jnp.zeros((B, H), jnp.float32))
    _, hs = jax.lax.scan(step, init, x)
    return hs @ w_fc.T + b_fc


if __name__ == "__main__":
    # Small shapes consistent with the module: seq=8, batch=2,
    # dim_input=16, dim_hidden=32, dim_out=8.
    T, B, D, H, O = 8, 2, 16, 32, 8

    key = jax.random.PRNGKey(0)
    ks = jax.random.split(key, 7)
    scale = 1.0 / jnp.sqrt(H)

    x = jax.random.normal(ks[0], (T, B, D), dtype=jnp.float32)
    w_ih = jax.random.uniform(ks[1], (4 * H, D), jnp.float32, -scale, scale)
    w_hh = jax.random.uniform(ks[2], (4 * H, H), jnp.float32, -scale, scale)
    b_ih = jax.random.uniform(ks[3], (4 * H,), jnp.float32, -scale, scale)
    b_hh = jax.random.uniform(ks[4], (4 * H,), jnp.float32, -scale, scale)
    w_fc = jax.random.uniform(ks[5], (O, H), jnp.float32, -scale, scale)
    b_fc = jax.random.uniform(ks[6], (O,), jnp.float32, -scale, scale)

    out = eeg_chung_forward(x, w_ih, w_hh, b_ih, b_hh, w_fc, b_fc)
    out = jax.block_until_ready(out)

    ref = _reference_forward(x, w_ih, w_hh, b_ih, b_hh, w_fc, b_fc)
    assert out.shape == (T, B, O)
    assert jnp.allclose(out, ref, atol=1e-4, rtol=1e-4), "mismatch vs reference"

    print("KERNEL_OK")
</pallas_src>

<mosaic_0001>
module attributes {stable_mosaic.version = 11 : i64} {
  func.func @_eeg_chung_kernel(%arg0: i32, %arg1: memref<8x2x16xf32, #tpu.memory_space<vmem>>, %arg2: memref<16x128xf32, #tpu.memory_space<vmem>>, %arg3: memref<32x128xf32, #tpu.memory_space<vmem>>, %arg4: memref<1x128xf32, #tpu.memory_space<vmem>>, %arg5: memref<32x8xf32, #tpu.memory_space<vmem>>, %arg6: memref<1x8xf32, #tpu.memory_space<vmem>>, %arg7: memref<8x2x8xf32, #tpu.memory_space<vmem>>, %arg8: memref<8x2x128xf32, #tpu.memory_space<vmem>>, %arg9: memref<8x2x32xf32, #tpu.memory_space<vmem>>) attributes {dimension_semantics = [#tpu.dimension_semantics<arbitrary>], iteration_bounds = array<i64: 1>, scalar_prefetch = 0 : i64, scratch_operands = 2 : i64, tpu.core_type = #tpu.core_type<tc>, window_params = [{pipeline_mode = #tpu.pipeline_mode<synchronous>, transform_indices = @transform_0, window_bounds = array<i64: 8, 2, 16>}, {pipeline_mode = #tpu.pipeline_mode<synchronous>, transform_indices = @transform_1, window_bounds = array<i64: 16, 128>}, {pipeline_mode = #tpu.pipeline_mode<synchronous>, transform_indices = @transform_2, window_bounds = array<i64: 32, 128>}, {pipeline_mode = #tpu.pipeline_mode<synchronous>, transform_indices = @transform_3, window_bounds = array<i64: 1, 128>}, {pipeline_mode = #tpu.pipeline_mode<synchronous>, transform_indices = @transform_4, window_bounds = array<i64: 32, 8>}, {pipeline_mode = #tpu.pipeline_mode<synchronous>, transform_indices = @transform_5, window_bounds = array<i64: 1, 8>}, {pipeline_mode = #tpu.pipeline_mode<synchronous>, transform_indices = @transform_6, window_bounds = array<i64: 8, 2, 8>}]} {
    %c0 = arith.constant 0 : index
    %c0_0 = arith.constant 0 : index
    %c0_1 = arith.constant 0 : index
    %0 = vector.load %arg1[%c0, %c0_0, %c0_1] : memref<8x2x16xf32, #tpu.memory_space<vmem>>, vector<8x2x16xf32>
    %1 = vector.shape_cast %0 : vector<8x2x16xf32> to vector<16x16xf32>
    %c0_2 = arith.constant 0 : index
    %c0_3 = arith.constant 0 : index
    %2 = vector.load %arg2[%c0_2, %c0_3] : memref<16x128xf32, #tpu.memory_space<vmem>>, vector<16x128xf32>
    %cst = arith.constant dense<0.000000e+00> : vector<16x128xf32>
    %3 = tpu.matmul %1, %2, %cst {dimension_numbers = #tpu.dot_dimension_numbers<[1], [0], [0], [1], [0, 0, 1, 1], [], []>} : vector<16x16xf32>, vector<16x128xf32>, vector<16x128xf32> -> vector<16x128xf32>
    %c0_4 = arith.constant 0 : index
    %c0_5 = arith.constant 0 : index
    %4 = vector.load %arg4[%c0_4, %c0_5] : memref<1x128xf32, #tpu.memory_space<vmem>>, vector<1x128xf32>
    %5 = vector.broadcast %4 : vector<1x128xf32> to vector<16x128xf32>
    %6 = arith.addf %3, %5 : vector<16x128xf32>
    %7 = vector.shape_cast %6 : vector<16x128xf32> to vector<8x2x128xf32>
    %c0_6 = arith.constant 0 : index
    %c0_7 = arith.constant 0 : index
    %c0_8 = arith.constant 0 : index
    %8 = vector.load %arg8[%c0_6, %c0_7, %c0_8] : memref<8x2x128xf32, #tpu.memory_space<vmem>>, vector<8x2x128xf32>
    tpu.vector_store %arg8[%c0_6, %c0_7, %c0_8], %7 {strides = array<i32>} : memref<8x2x128xf32, #tpu.memory_space<vmem>>, vector<8x2x128xf32>,
    %cst_9 = arith.constant 0.000000e+00 : f32
    %9 = vector.broadcast %cst_9 : f32 to vector<2x32xf32>
    %c0_i32 = arith.constant 0 : i32
    %10 = arith.index_cast %c0_i32 : i32 to index
    %c0_10 = arith.constant 0 : index
    %c0_11 = arith.constant 0 : index
    %11 = vector.load %arg8[%10, %c0_10, %c0_11] : memref<8x2x128xf32, #tpu.memory_space<vmem>>, vector<1x2x128xf32>
    %12 = vector.shape_cast %11 : vector<1x2x128xf32> to vector<2x128xf32>
    %c0_12 = arith.constant 0 : index
    %c0_13 = arith.constant 0 : index
    %13 = vector.load %arg3[%c0_12, %c0_13] : memref<32x128xf32, #tpu.memory_space<vmem>>, vector<32x128xf32>
    %cst_14 = arith.constant dense<0.000000e+00> : vector<2x128xf32>
    %14 = tpu.matmul %9, %13, %cst_14 {dimension_numbers = #tpu.dot_dimension_numbers<[1], [0], [0], [1], [0, 0, 1, 1], [], []>} : vector<2x32xf32>, vector<32x128xf32>, vector<2x128xf32> -> vector<2x128xf32>
    %15 = arith.addf %12, %14 : vector<2x128xf32>
    %16 = vector.extract_strided_slice %15 {offsets = [0, 0], sizes = [2, 96], strides = [1, 1]} : vector<2x128xf32> to vector<2x96xf32>
    %17 = arith.negf %16 : vector<2x96xf32>
    %18 = math.exp %17 : vector<2x96xf32>
    %cst_15 = arith.constant 1.000000e+00 : f32
    %19 = vector.broadcast %cst_15 : f32 to vector<2x96xf32>
    %20 = arith.addf %19, %18 : vector<2x96xf32>
    %21 = arith.divf %19, %20 : vector<2x96xf32>
    %22 = vector.extract_strided_slice %21 {offsets = [0, 0], sizes = [2, 32], strides = [1, 1]} : vector<2x96xf32> to vector<2x32xf32>
    %23 = vector.extract_strided_slice %21 {offsets = [0, 32], sizes = [2, 32], strides = [1, 1]} : vector<2x96xf32> to vector<2x32xf32>
    %24 = vector.extract_strided_slice %21 {offsets = [0, 64], sizes = [2, 32], strides = [1, 1]} : vector<2x96xf32> to vector<2x32xf32>
    %25 = vector.extract_strided_slice %15 {offsets = [0, 96], sizes = [2, 32], strides = [1, 1]} : vector<2x128xf32> to vector<2x32xf32>
    %26 = math.tanh %25 : vector<2x32xf32>
    %27 = arith.mulf %23, %9 : vector<2x32xf32>
    %28 = arith.mulf %22, %26 : vector<2x32xf32>
    %29 = arith.addf %27, %28 : vector<2x32xf32>
    %30 = math.tanh %29 : vector<2x32xf32>
    %31 = arith.mulf %24, %30 : vector<2x32xf32>
    %32 = arith.index_cast %c0_i32 : i32 to index
    %c0_16 = arith.constant 0 : index
    %c0_17 = arith.constant 0 : index
    %33 = vector.load %arg9[%32, %c0_16, %c0_17] : memref<8x2x32xf32, #tpu.memory_space<vmem>>, vector<1x2x32xf32>
    %34 = vector.shape_cast %33 : vector<1x2x32xf32> to vector<2x32xf32>
    %35 = vector.shape_cast %31 : vector<2x32xf32> to vector<1x2x32xf32>
    tpu.vector_store %arg9[%32, %c0_16, %c0_17], %35 {strides = array<i32>} : memref<8x2x32xf32, #tpu.memory_space<vmem>>, vector<1x2x32xf32>,
    %c1_i32 = arith.constant 1 : i32
    %36 = arith.index_cast %c1_i32 : i32 to index
    %c0_18 = arith.constant 0 : index
    %c0_19 = arith.constant 0 : index
    %37 = vector.load %arg8[%36, %c0_18, %c0_19] : memref<8x2x128xf32, #tpu.memory_space<vmem>>, vector<1x2x128xf32>
    %38 = vector.shape_cast %37 : vector<1x2x128xf32> to vector<2x128xf32>
    %c0_20 = arith.constant 0 : index
    %c0_21 = arith.constant 0 : index
    %39 = vector.load %arg3[%c0_20, %c0_21] : memref<32x128xf32, #tpu.memory_space<vmem>>, vector<32x128xf32>
    %cst_22 = arith.constant dense<0.000000e+00> : vector<2x128xf32>
    %40 = tpu.matmul %31, %39, %cst_22 {dimension_numbers = #tpu.dot_dimension_numbers<[1], [0], [0], [1], [0, 0, 1, 1], [], []>} : vector<2x32xf32>, vector<32x128xf32>, vector<2x128xf32> -> vector<2x128xf32>
    %41 = arith.addf %38, %40 : vector<2x128xf32>
    %42 = vector.extract_strided_slice %41 {offsets = [0, 0], sizes = [2, 96], strides = [1, 1]} : vector<2x128xf32> to vector<2x96xf32>
    %43 = arith.negf %42 : vector<2x96xf32>
    %44 = math.exp %43 : vector<2x96xf32>
    %cst_23 = arith.constant 1.000000e+00 : f32
    %45 = vector.broadcast %cst_23 : f32 to vector<2x96xf32>
    %46 = arith.addf %45, %44 : vector<2x96xf32>
    %47 = arith.divf %45, %46 : vector<2x96xf32>
    %48 = vector.extract_strided_slice %47 {offsets = [0, 0], sizes = [2, 32], strides = [1, 1]} : vector<2x96xf32> to vector<2x32xf32>
    %49 = vector.extract_strided_slice %47 {offsets = [0, 32], sizes = [2, 32], strides = [1, 1]} : vector<2x96xf32> to vector<2x32xf32>
    %50 = vector.extract_strided_slice %47 {offsets = [0, 64], sizes = [2, 32], strides = [1, 1]} : vector<2x96xf32> to vector<2x32xf32>
    %51 = vector.extract_strided_slice %41 {offsets = [0, 96], sizes = [2, 32], strides = [1, 1]} : vector<2x128xf32> to vector<2x32xf32>
    %52 = math.tanh %51 : vector<2x32xf32>
    %53 = arith.mulf %49, %29 : vector<2x32xf32>
    %54 = arith.mulf %48, %52 : vector<2x32xf32>
    %55 = arith.addf %53, %54 : vector<2x32xf32>
    %56 = math.tanh %55 : vector<2x32xf32>
    %57 = arith.mulf %50, %56 : vector<2x32xf32>
    %58 = arith.index_cast %c1_i32 : i32 to index
    %c0_24 = arith.constant 0 : index
    %c0_25 = arith.constant 0 : index
    %59 = vector.load %arg9[%58, %c0_24, %c0_25] : memref<8x2x32xf32, #tpu.memory_space<vmem>>, vector<1x2x32xf32>
    %60 = vector.shape_cast %59 : vector<1x2x32xf32> to vector<2x32xf32>
    %61 = vector.shape_cast %57 : vector<2x32xf32> to vector<1x2x32xf32>
    tpu.vector_store %arg9[%58, %c0_24, %c0_25], %61 {strides = array<i32>} : memref<8x2x32xf32, #tpu.memory_space<vmem>>, vector<1x2x32xf32>,
    %c2_i32 = arith.constant 2 : i32
    %62 = arith.index_cast %c2_i32 : i32 to index
    %c0_26 = arith.constant 0 : index
    %c0_27 = arith.constant 0 : index
    %63 = vector.load %arg8[%62, %c0_26, %c0_27] : memref<8x2x128xf32, #tpu.memory_space<vmem>>, vector<1x2x128xf32>
    %64 = vector.shape_cast %63 : vector<1x2x128xf32> to vector<2x128xf32>
    %c0_28 = arith.constant 0 : index
    %c0_29 = arith.constant 0 : index
    %65 = vector.load %arg3[%c0_28, %c0_29] : memref<32x128xf32, #tpu.memory_space<vmem>>, vector<32x128xf32>
    %cst_30 = arith.constant dense<0.000000e+00> : vector<2x128xf32>
    %66 = tpu.matmul %57, %65, %cst_30 {dimension_numbers = #tpu.dot_dimension_numbers<[1], [0], [0], [1], [0, 0, 1, 1], [], []>} : vector<2x32xf32>, vector<32x128xf32>, vector<2x128xf32> -> vector<2x128xf32>
    %67 = arith.addf %64, %66 : vector<2x128xf32>
    %68 = vector.extract_strided_slice %67 {offsets = [0, 0], sizes = [2, 96], strides = [1, 1]} : vector<2x128xf32> to vector<2x96xf32>
    %69 = arith.negf %68 : vector<2x96xf32>
    %70 = math.exp %69 : vector<2x96xf32>
    %cst_31 = arith.constant 1.000000e+00 : f32
    %71 = vector.broadcast %cst_31 : f32 to vector<2x96xf32>
    %72 = arith.addf %71, %70 : vector<2x96xf32>
    %73 = arith.divf %71, %72 : vector<2x96xf32>
    %74 = vector.extract_strided_slice %73 {offsets = [0, 0], sizes = [2, 32], strides = [1, 1]} : vector<2x96xf32> to vector<2x32xf32>
    %75 = vector.extract_strided_slice %73 {offsets = [0, 32], sizes = [2, 32], strides = [1, 1]} : vector<2x96xf32> to vector<2x32xf32>
    %76 = vector.extract_strided_slice %73 {offsets = [0, 64], sizes = [2, 32], strides = [1, 1]} : vector<2x96xf32> to vector<2x32xf32>
    %77 = vector.extract_strided_slice %67 {offsets = [0, 96], sizes = [2, 32], strides = [1, 1]} : vector<2x128xf32> to vector<2x32xf32>
    %78 = math.tanh %77 : vector<2x32xf32>
    %79 = arith.mulf %75, %55 : vector<2x32xf32>
    %80 = arith.mulf %74, %78 : vector<2x32xf32>
    %81 = arith.addf %79, %80 : vector<2x32xf32>
    %82 = math.tanh %81 : vector<2x32xf32>
    %83 = arith.mulf %76, %82 : vector<2x32xf32>
    %84 = arith.index_cast %c2_i32 : i32 to index
    %c0_32 = arith.constant 0 : index
    %c0_33 = arith.constant 0 : index
    %85 = vector.load %arg9[%84, %c0_32, %c0_33] : memref<8x2x32xf32, #tpu.memory_space<vmem>>, vector<1x2x32xf32>
    %86 = vector.shape_cast %85 : vector<1x2x32xf32> to vector<2x32xf32>
    %87 = vector.shape_cast %83 : vector<2x32xf32> to vector<1x2x32xf32>
    tpu.vector_store %arg9[%84, %c0_32, %c0_33], %87 {strides = array<i32>} : memref<8x2x32xf32, #tpu.memory_space<vmem>>, vector<1x2x32xf32>,
    %c3_i32 = arith.constant 3 : i32
    %88 = arith.index_cast %c3_i32 : i32 to index
    %c0_34 = arith.constant 0 : index
    %c0_35 = arith.constant 0 : index
    %89 = vector.load %arg8[%88, %c0_34, %c0_35] : memref<8x2x128xf32, #tpu.memory_space<vmem>>, vector<1x2x128xf32>
    %90 = vector.shape_cast %89 : vector<1x2x128xf32> to vector<2x128xf32>
    %c0_36 = arith.constant 0 : index
    %c0_37 = arith.constant 0 : index
    %91 = vector.load %arg3[%c0_36, %c0_37] : memref<32x128xf32, #tpu.memory_space<vmem>>, vector<32x128xf32>
    %cst_38 = arith.constant dense<0.000000e+00> : vector<2x128xf32>
    %92 = tpu.matmul %83, %91, %cst_38 {dimension_numbers = #tpu.dot_dimension_numbers<[1], [0], [0], [1], [0, 0, 1, 1], [], []>} : vector<2x32xf32>, vector<32x128xf32>, vector<2x128xf32> -> vector<2x128xf32>
    %93 = arith.addf %90, %92 : vector<2x128xf32>
    %94 = vector.extract_strided_slice %93 {offsets = [0, 0], sizes = [2, 96], strides = [1, 1]} : vector<2x128xf32> to vector<2x96xf32>
    %95 = arith.negf %94 : vector<2x96xf32>
    %96 = math.exp %95 : vector<2x96xf32>
    %cst_39 = arith.constant 1.000000e+00 : f32
    %97 = vector.broadcast %cst_39 : f32 to vector<2x96xf32>
    %98 = arith.addf %97, %96 : vector<2x96xf32>
    %99 = arith.divf %97, %98 : vector<2x96xf32>
    %100 = vector.extract_strided_slice %99 {offsets = [0, 0], sizes = [2, 32], strides = [1, 1]} : vector<2x96xf32> to vector<2x32xf32>
    %101 = vector.extract_strided_slice %99 {offsets = [0, 32], sizes = [2, 32], strides = [1, 1]} : vector<2x96xf32> to vector<2x32xf32>
    %102 = vector.extract_strided_slice %99 {offsets = [0, 64], sizes = [2, 32], strides = [1, 1]} : vector<2x96xf32> to vector<2x32xf32>
    %103 = vector.extract_strided_slice %93 {offsets = [0, 96], sizes = [2, 32], strides = [1, 1]} : vector<2x128xf32> to vector<2x32xf32>
    %104 = math.tanh %103 : vector<2x32xf32>
    %105 = arith.mulf %101, %81 : vector<2x32xf32>
    %106 = arith.mulf %100, %104 : vector<2x32xf32>
    %107 = arith.addf %105, %106 : vector<2x32xf32>
    %108 = math.tanh %107 : vector<2x32xf32>
    %109 = arith.mulf %102, %108 : vector<2x32xf32>
    %110 = arith.index_cast %c3_i32 : i32 to index
    %c0_40 = arith.constant 0 : index
    %c0_41 = arith.constant 0 : index
    %111 = vector.load %arg9[%110, %c0_40, %c0_41] : memref<8x2x32xf32, #tpu.memory_space<vmem>>, vector<1x2x32xf32>
    %112 = vector.shape_cast %111 : vector<1x2x32xf32> to vector<2x32xf32>
    %113 = vector.shape_cast %109 : vector<2x32xf32> to vector<1x2x32xf32>
    tpu.vector_store %arg9[%110, %c0_40, %c0_41], %113 {strides = array<i32>} : memref<8x2x32xf32, #tpu.memory_space<vmem>>, vector<1x2x32xf32>,
    %c4_i32 = arith.constant 4 : i32
    %114 = arith.index_cast %c4_i32 : i32 to index
    %c0_42 = arith.constant 0 : index
    %c0_43 = arith.constant 0 : index
    %115 = vector.load %arg8[%114, %c0_42, %c0_43] : memref<8x2x128xf32, #tpu.memory_space<vmem>>, vector<1x2x128xf32>
    %116 = vector.shape_cast %115 : vector<1x2x128xf32> to vector<2x128xf32>
    %c0_44 = arith.constant 0 : index
    %c0_45 = arith.constant 0 : index
    %117 = vector.load %arg3[%c0_44, %c0_45] : memref<32x128xf32, #tpu.memory_space<vmem>>, vector<32x128xf32>
    %cst_46 = arith.constant dense<0.000000e+00> : vector<2x128xf32>
    %118 = tpu.matmul %109, %117, %cst_46 {dimension_numbers = #tpu.dot_dimension_numbers<[1], [0], [0], [1], [0, 0, 1, 1], [], []>} : vector<2x32xf32>, vector<32x128xf32>, vector<2x128xf32> -> vector<2x128xf32>
    %119 = arith.addf %116, %118 : vector<2x128xf32>
    %120 = vector.extract_strided_slice %119 {offsets = [0, 0], sizes = [2, 96], strides = [1, 1]} : vector<2x128xf32> to vector<2x96xf32>
    %121 = arith.negf %120 : vector<2x96xf32>
    %122 = math.exp %121 : vector<2x96xf32>
    %cst_47 = arith.constant 1.000000e+00 : f32
    %123 = vector.broadcast %cst_47 : f32 to vector<2x96xf32>
    %124 = arith.addf %123, %122 : vector<2x96xf32>
    %125 = arith.divf %123, %124 : vector<2x96xf32>
    %126 = vector.extract_strided_slice %125 {offsets = [0, 0], sizes = [2, 32], strides = [1, 1]} : vector<2x96xf32> to vector<2x32xf32>
    %127 = vector.extract_strided_slice %125 {offsets = [0, 32], sizes = [2, 32], strides = [1, 1]} : vector<2x96xf32> to vector<2x32xf32>
    %128 = vector.extract_strided_slice %125 {offsets = [0, 64], sizes = [2, 32], strides = [1, 1]} : vector<2x96xf32> to vector<2x32xf32>
    %129 = vector.extract_strided_slice %119 {offsets = [0, 96], sizes = [2, 32], strides = [1, 1]} : vector<2x128xf32> to vector<2x32xf32>
    %130 = math.tanh %129 : vector<2x32xf32>
    %131 = arith.mulf %127, %107 : vector<2x32xf32>
    %132 = arith.mulf %126, %130 : vector<2x32xf32>
    %133 = arith.addf %131, %132 : vector<2x32xf32>
    %134 = math.tanh %133 : vector<2x32xf32>
    %135 = arith.mulf %128, %134 : vector<2x32xf32>
    %136 = arith.index_cast %c4_i32 : i32 to index
    %c0_48 = arith.constant 0 : index
    %c0_49 = arith.constant 0 : index
    %137 = vector.load %arg9[%136, %c0_48, %c0_49] : memref<8x2x32xf32, #tpu.memory_space<vmem>>, vector<1x2x32xf32>
    %138 = vector.shape_cast %137 : vector<1x2x32xf32> to vector<2x32xf32>
    %139 = vector.shape_cast %135 : vector<2x32xf32> to vector<1x2x32xf32>
    tpu.vector_store %arg9[%136, %c0_48, %c0_49], %139 {strides = array<i32>} : memref<8x2x32xf32, #tpu.memory_space<vmem>>, vector<1x2x32xf32>,
    %c5_i32 = arith.constant 5 : i32
    %140 = arith.index_cast %c5_i32 : i32 to index
    %c0_50 = arith.constant 0 : index
    %c0_51 = arith.constant 0 : index
    %141 = vector.load %arg8[%140, %c0_50, %c0_51] : memref<8x2x128xf32, #tpu.memory_space<vmem>>, vector<1x2x128xf32>
    %142 = vector.shape_cast %141 : vector<1x2x128xf32> to vector<2x128xf32>
    %c0_52 = arith.constant 0 : index
    %c0_53 = arith.constant 0 : index
    %143 = vector.load %arg3[%c0_52, %c0_53] : memref<32x128xf32, #tpu.memory_space<vmem>>, vector<32x128xf32>
    %cst_54 = arith.constant dense<0.000000e+00> : vector<2x128xf32>
    %144 = tpu.matmul %135, %143, %cst_54 {dimension_numbers = #tpu.dot_dimension_numbers<[1], [0], [0], [1], [0, 0, 1, 1], [], []>} : vector<2x32xf32>, vector<32x128xf32>, vector<2x128xf32> -> vector<2x128xf32>
    %145 = arith.addf %142, %144 : vector<2x128xf32>
    %146 = vector.extract_strided_slice %145 {offsets = [0, 0], sizes = [2, 96], strides = [1, 1]} : vector<2x128xf32> to vector<2x96xf32>
    %147 = arith.negf %146 : vector<2x96xf32>
    %148 = math.exp %147 : vector<2x96xf32>
    %cst_55 = arith.constant 1.000000e+00 : f32
    %149 = vector.broadcast %cst_55 : f32 to vector<2x96xf32>
    %150 = arith.addf %149, %148 : vector<2x96xf32>
    %151 = arith.divf %149, %150 : vector<2x96xf32>
    %152 = vector.extract_strided_slice %151 {offsets = [0, 0], sizes = [2, 32], strides = [1, 1]} : vector<2x96xf32> to vector<2x32xf32>
    %153 = vector.extract_strided_slice %151 {offsets = [0, 32], sizes = [2, 32], strides = [1, 1]} : vector<2x96xf32> to vector<2x32xf32>
    %154 = vector.extract_strided_slice %151 {offsets = [0, 64], sizes = [2, 32], strides = [1, 1]} : vector<2x96xf32> to vector<2x32xf32>
    %155 = vector.extract_strided_slice %145 {offsets = [0, 96], sizes = [2, 32], strides = [1, 1]} : vector<2x128xf32> to vector<2x32xf32>
    %156 = math.tanh %155 : vector<2x32xf32>
    %157 = arith.mulf %153, %133 : vector<2x32xf32>
    %158 = arith.mulf %152, %156 : vector<2x32xf32>
    %159 = arith.addf %157, %158 : vector<2x32xf32>
    %160 = math.tanh %159 : vector<2x32xf32>
    %161 = arith.mulf %154, %160 : vector<2x32xf32>
    %162 = arith.index_cast %c5_i32 : i32 to index
    %c0_56 = arith.constant 0 : index
    %c0_57 = arith.constant 0 : index
    %163 = vector.load %arg9[%162, %c0_56, %c0_57] : memref<8x2x32xf32, #tpu.memory_space<vmem>>, vector<1x2x32xf32>
    %164 = vector.shape_cast %163 : vector<1x2x32xf32> to vector<2x32xf32>
    %165 = vector.shape_cast %161 : vector<2x32xf32> to vector<1x2x32xf32>
    tpu.vector_store %arg9[%162, %c0_56, %c0_57], %165 {strides = array<i32>} : memref<8x2x32xf32, #tpu.memory_space<vmem>>, vector<1x2x32xf32>,
    %c6_i32 = arith.constant 6 : i32
    %166 = arith.index_cast %c6_i32 : i32 to index
    %c0_58 = arith.constant 0 : index
    %c0_59 = arith.constant 0 : index
    %167 = vector.load %arg8[%166, %c0_58, %c0_59] : memref<8x2x128xf32, #tpu.memory_space<vmem>>, vector<1x2x128xf32>
    %168 = vector.shape_cast %167 : vector<1x2x128xf32> to vector<2x128xf32>
    %c0_60 = arith.constant 0 : index
    %c0_61 = arith.constant 0 : index
    %169 = vector.load %arg3[%c0_60, %c0_61] : memref<32x128xf32, #tpu.memory_space<vmem>>, vector<32x128xf32>
    %cst_62 = arith.constant dense<0.000000e+00> : vector<2x128xf32>
    %170 = tpu.matmul %161, %169, %cst_62 {dimension_numbers = #tpu.dot_dimension_numbers<[1], [0], [0], [1], [0, 0, 1, 1], [], []>} : vector<2x32xf32>, vector<32x128xf32>, vector<2x128xf32> -> vector<2x128xf32>
    %171 = arith.addf %168, %170 : vector<2x128xf32>
    %172 = vector.extract_strided_slice %171 {offsets = [0, 0], sizes = [2, 96], strides = [1, 1]} : vector<2x128xf32> to vector<2x96xf32>
    %173 = arith.negf %172 : vector<2x96xf32>
    %174 = math.exp %173 : vector<2x96xf32>
    %cst_63 = arith.constant 1.000000e+00 : f32
    %175 = vector.broadcast %cst_63 : f32 to vector<2x96xf32>
    %176 = arith.addf %175, %174 : vector<2x96xf32>
    %177 = arith.divf %175, %176 : vector<2x96xf32>
    %178 = vector.extract_strided_slice %177 {offsets = [0, 0], sizes = [2, 32], strides = [1, 1]} : vector<2x96xf32> to vector<2x32xf32>
    %179 = vector.extract_strided_slice %177 {offsets = [0, 32], sizes = [2, 32], strides = [1, 1]} : vector<2x96xf32> to vector<2x32xf32>
    %180 = vector.extract_strided_slice %177 {offsets = [0, 64], sizes = [2, 32], strides = [1, 1]} : vector<2x96xf32> to vector<2x32xf32>
    %181 = vector.extract_strided_slice %171 {offsets = [0, 96], sizes = [2, 32], strides = [1, 1]} : vector<2x128xf32> to vector<2x32xf32>
    %182 = math.tanh %181 : vector<2x32xf32>
    %183 = arith.mulf %179, %159 : vector<2x32xf32>
    %184 = arith.mulf %178, %182 : vector<2x32xf32>
    %185 = arith.addf %183, %184 : vector<2x32xf32>
    %186 = math.tanh %185 : vector<2x32xf32>
    %187 = arith.mulf %180, %186 : vector<2x32xf32>
    %188 = arith.index_cast %c6_i32 : i32 to index
    %c0_64 = arith.constant 0 : index
    %c0_65 = arith.constant 0 : index
    %189 = vector.load %arg9[%188, %c0_64, %c0_65] : memref<8x2x32xf32, #tpu.memory_space<vmem>>, vector<1x2x32xf32>
    %190 = vector.shape_cast %189 : vector<1x2x32xf32> to vector<2x32xf32>
    %191 = vector.shape_cast %187 : vector<2x32xf32> to vector<1x2x32xf32>
    tpu.vector_store %arg9[%188, %c0_64, %c0_65], %191 {strides = array<i32>} : memref<8x2x32xf32, #tpu.memory_space<vmem>>, vector<1x2x32xf32>,
    %c7_i32 = arith.constant 7 : i32
    %192 = arith.index_cast %c7_i32 : i32 to index
    %c0_66 = arith.constant 0 : index
    %c0_67 = arith.constant 0 : index
    %193 = vector.load %arg8[%192, %c0_66, %c0_67] : memref<8x2x128xf32, #tpu.memory_space<vmem>>, vector<1x2x128xf32>
    %194 = vector.shape_cast %193 : vector<1x2x128xf32> to vector<2x128xf32>
    %c0_68 = arith.constant 0 : index
    %c0_69 = arith.constant 0 : index
    %195 = vector.load %arg3[%c0_68, %c0_69] : memref<32x128xf32, #tpu.memory_space<vmem>>, vector<32x128xf32>
    %cst_70 = arith.constant dense<0.000000e+00> : vector<2x128xf32>
    %196 = tpu.matmul %187, %195, %cst_70 {dimension_numbers = #tpu.dot_dimension_numbers<[1], [0], [0], [1], [0, 0, 1, 1], [], []>} : vector<2x32xf32>, vector<32x128xf32>, vector<2x128xf32> -> vector<2x128xf32>
    %197 = arith.addf %194, %196 : vector<2x128xf32>
    %198 = vector.extract_strided_slice %197 {offsets = [0, 0], sizes = [2, 96], strides = [1, 1]} : vector<2x128xf32> to vector<2x96xf32>
    %199 = arith.negf %198 : vector<2x96xf32>
    %200 = math.exp %199 : vector<2x96xf32>
    %cst_71 = arith.constant 1.000000e+00 : f32
    %201 = vector.broadcast %cst_71 : f32 to vector<2x96xf32>
    %202 = arith.addf %201, %200 : vector<2x96xf32>
    %203 = arith.divf %201, %202 : vector<2x96xf32>
    %204 = vector.extract_strided_slice %203 {offsets = [0, 0], sizes = [2, 32], strides = [1, 1]} : vector<2x96xf32> to vector<2x32xf32>
    %205 = vector.extract_strided_slice %203 {offsets = [0, 32], sizes = [2, 32], strides = [1, 1]} : vector<2x96xf32> to vector<2x32xf32>
    %206 = vector.extract_strided_slice %203 {offsets = [0, 64], sizes = [2, 32], strides = [1, 1]} : vector<2x96xf32> to vector<2x32xf32>
    %207 = vector.extract_strided_slice %197 {offsets = [0, 96], sizes = [2, 32], strides = [1, 1]} : vector<2x128xf32> to vector<2x32xf32>
    %208 = math.tanh %207 : vector<2x32xf32>
    %209 = arith.mulf %205, %185 : vector<2x32xf32>
    %210 = arith.mulf %204, %208 : vector<2x32xf32>
    %211 = arith.addf %209, %210 : vector<2x32xf32>
    %212 = math.tanh %211 : vector<2x32xf32>
    %213 = arith.mulf %206, %212 : vector<2x32xf32>
    %214 = arith.index_cast %c7_i32 : i32 to index
    %c0_72 = arith.constant 0 : index
    %c0_73 = arith.constant 0 : index
    %215 = vector.load %arg9[%214, %c0_72, %c0_73] : memref<8x2x32xf32, #tpu.memory_space<vmem>>, vector<1x2x32xf32>
    %216 = vector.shape_cast %215 : vector<1x2x32xf32> to vector<2x32xf32>
    %217 = vector.shape_cast %213 : vector<2x32xf32> to vector<1x2x32xf32>
    tpu.vector_store %arg9[%214, %c0_72, %c0_73], %217 {strides = array<i32>} : memref<8x2x32xf32, #tpu.memory_space<vmem>>, vector<1x2x32xf32>,
    %c8_i32 = arith.constant 8 : i32
    %c0_74 = arith.constant 0 : index
    %c0_75 = arith.constant 0 : index
    %c0_76 = arith.constant 0 : index
    %218 = vector.load %arg9[%c0_74, %c0_75, %c0_76] : memref<8x2x32xf32, #tpu.memory_space<vmem>>, vector<8x2x32xf32>
    %219 = vector.shape_cast %218 : vector<8x2x32xf32> to vector<16x32xf32>
    %c0_77 = arith.constant 0 : index
    %c0_78 = arith.constant 0 : index
    %220 = vector.load %arg5[%c0_77, %c0_78] : memref<32x8xf32, #tpu.memory_space<vmem>>, vector<32x8xf32>
    %cst_79 = arith.constant dense<0.000000e+00> : vector<16x8xf32>
    %221 = tpu.matmul %219, %220, %cst_79 {dimension_numbers = #tpu.dot_dimension_numbers<[1], [0], [0], [1], [0, 0, 1, 1], [], []>} : vector<16x32xf32>, vector<32x8xf32>, vector<16x8xf32> -> vector<16x8xf32>
    %c0_80 = arith.constant 0 : index
    %c0_81 = arith.constant 0 : index
    %222 = vector.load %arg6[%c0_80, %c0_81] : memref<1x8xf32, #tpu.memory_space<vmem>>, vector<1x8xf32>
    %223 = vector.broadcast %222 : vector<1x8xf32> to vector<16x8xf32>
    %224 = arith.addf %221, %223 : vector<16x8xf32>
    %225 = vector.shape_cast %224 : vector<16x8xf32> to vector<8x2x8xf32>
    %c0_82 = arith.constant 0 : index
    %c0_83 = arith.constant 0 : index
    %c0_84 = arith.constant 0 : index
    %226 = vector.load %arg7[%c0_82, %c0_83, %c0_84] : memref<8x2x8xf32, #tpu.memory_space<vmem>>, vector<8x2x8xf32>
    tpu.vector_store %arg7[%c0_82, %c0_83, %c0_84], %225 {strides = array<i32>} : memref<8x2x8xf32, #tpu.memory_space<vmem>>, vector<8x2x8xf32>,
    return
  }
  func.func @transform_0(%arg0: i32) -> (i32, i32, i32) {
    %c0_i32 = arith.constant 0 : i32
    %c0_i32_0 = arith.constant 0 : i32
    %c0_i32_1 = arith.constant 0 : i32
    %c0_i32_2 = arith.constant 0 : i32
    return %c0_i32, %c0_i32_0, %c0_i32_1 : i32, i32, i32
  }
  func.func @transform_1(%arg0: i32) -> (i32, i32) {
    %c0_i32 = arith.constant 0 : i32
    %c0_i32_0 = arith.constant 0 : i32
    %c0_i32_1 = arith.constant 0 : i32
    return %c0_i32, %c0_i32_0 : i32, i32
  }
  func.func @transform_2(%arg0: i32) -> (i32, i32) {
    %c0_i32 = arith.constant 0 : i32
    %c0_i32_0 = arith.constant 0 : i32
    %c0_i32_1 = arith.constant 0 : i32
    return %c0_i32, %c0_i32_0 : i32, i32
  }
  func.func @transform_3(%arg0: i32) -> (i32, i32) {
    %c0_i32 = arith.constant 0 : i32
    %c0_i32_0 = arith.constant 0 : i32
    %c0_i32_1 = arith.constant 0 : i32
    return %c0_i32, %c0_i32_0 : i32, i32
  }
  func.func @transform_4(%arg0: i32) -> (i32, i32) {
    %c0_i32 = arith.constant 0 : i32
    %c0_i32_0 = arith.constant 0 : i32
    %c0_i32_1 = arith.constant 0 : i32
    return %c0_i32, %c0_i32_0 : i32, i32
  }
  func.func @transform_5(%arg0: i32) -> (i32, i32) {
    %c0_i32 = arith.constant 0 : i32
    %c0_i32_0 = arith.constant 0 : i32
    %c0_i32_1 = arith.constant 0 : i32
    return %c0_i32, %c0_i32_0 : i32, i32
  }
  func.func @transform_6(%arg0: i32) -> (i32, i32, i32) {
    %c0_i32 = arith.constant 0 : i32
    %c0_i32_0 = arith.constant 0 : i32
    %c0_i32_1 = arith.constant 0 : i32
    %c0_i32_2 = arith.constant 0 : i32
    return %c0_i32, %c0_i32_0, %c0_i32_1 : i32, i32, i32
  }
}

</mosaic_0001>

<bundles_post_ra>
// kernel: eeg_chung_forward.1
= control target key start
LH: loop header
LB: loop body
LE: loop exit
PB: predicated region body
PF: predicated region fallthrough
CT: control target
= control target key end

     0   :  { %s1131_s0 = inlined_call_operand.vmem [shape: f32[8,2,16], index: 0, kind: input, shape index: {}]   ;;  %s1132_s1 = inlined_call_operand.vmem [shape: f32[16,128], index: 1, kind: input, shape index: {}]   ;;  %s1133_s2 = inlined_call_operand.vmem [shape: f32[32,128], index: 2, kind: input, shape index: {}]   ;;  %s1134_s3 = inlined_call_operand.vmem [shape: f32[1,128], index: 3, kind: input, shape index: {}]   ;;  %s1135_s4 = inlined_call_operand.vmem [shape: f32[32,8], index: 4, kind: input, shape index: {}]   ;;  %s1136_s5 = inlined_call_operand.vmem [shape: f32[1,8], index: 5, kind: input, shape index: {}]   ;;  %s1137_s6 = inlined_call_operand.hbm [shape: f32[8,2,8], index: 6, kind: output, shape index: {}]  }
   0x1   :  { %v33_v0 = vld [vmem:[%s1132_s1 + $0x8] sm:$0xff]  ;;  %v32_v1 = vld [vmem:[%s1132_s1] sm:$0xff]  ;;  %v976_v6 = vld [vmem:[%s1133_s2 + $0x18] sm:$0xff] }
   0x2   :  { %v24_v2 = vld [vmem:[%s1131_s0] sm:$0x3]  ;;  %82 = vmatpush.msra.mxu0 %v33_v0  ;;  %v25_v3 = vld [vmem:[%s1131_s0 + $0x2] sm:$0x3]  ;;  %v26_v4 = vld [vmem:[%s1131_s0 + $0x4] sm:$0x3]  ;;  %134 = vmatpush.msra.mxu1 %v976_v6 }
   0x3   :  { %v27_v5 = vld [vmem:[%s1131_s0 + $0x6] sm:$0x3]  ;;  %46 = vst [vmem:[#allocation1] ss:$4 sm:$0xff] %v24_v2  ;;  %v981_v7 = vld [vmem:[%s1133_s2 + $0x10] sm:$0xff]  ;;  %v987_v8 = vld [vmem:[%s1133_s2 + $0x8] sm:$0xff]  ;;  %206 = vmatpush.msra.mxu3 %v976_v6  ;;  %422 = vmatpush.msra.mxu2 %v976_v6 }
   0x4   :  { %83 = vmatpush.msra.mxu0 %v32_v1  ;;  %48 = vst [vmem:[#allocation1 + $0x1] ss:$4 sm:$0xff] %v25_v3  ;;  %135 = vmatpush.msra.mxu1 %v981_v7 }
   0x5   :  { %50 = vst [vmem:[#allocation1 + $0x2] ss:$4 sm:$0xff] %v26_v4 }
   0x6   :  { %52 = vst [vmem:[#allocation1 + $0x3] ss:$4 sm:$0xff] %v27_v5  ;;  %566 = vmatpush.msrb.mxu0 %v976_v6 }
   0x7   :  { %11 = vsyncpa [#allocation5], 0  ;;  %v996_v9 = vld [vmem:[%s1133_s2] sm:$0xff]  ;;  %207 = vmatpush.msra.mxu3 %v981_v7  ;;  %423 = vmatpush.msra.mxu2 %v981_v7  ;;  %vm63_vm0 = vcmask 130048   ;;  %v915_v10 = vmov 0.0   ;;  %s916_s17 = smov 32  }
   0x8   :  { %136 = vmatpush.msra.mxu1 %v987_v8  ;;  %567 = vmatpush.msrb.mxu0 %v981_v7  ;;  %v1025_v12 = vld [vmem:[%s1134_s3] ss:$0 sm:$0xff]  ;;  %s917_s3 = smov 64   ;;  %vm184_vm5 = vcmask 254976   ;;  %vm118_vm6 = vcmask 261120   ;;  %s787_s12 = sshll.u32 %s1137_s6, 4  ;;  %s788_s12 = int_to_ptr.hbm [resolvable:$true] %s787_s12 }
   0x9   :  { %208 = vmatpush.msra.mxu3 %v987_v8  ;;  %424 = vmatpush.msra.mxu2 %v987_v8  ;;  %s919_s13 = smov 2  }
   0xa   :  { %137 = vmatpush.msra.mxu1 %v996_v9  ;;  %568 = vmatpush.msrb.mxu0 %v987_v8 }
   0xb   :  { %138 = vmatmul.f32.vlgmr.msra.gmra.mxu1 %v915_v10  ;;  %209 = vmatpush.msra.mxu3 %v996_v9 }
   0xc   :  { %350 = vmatpush.msrb.mxu1 %v976_v6  ;;  %425 = vmatpush.msra.mxu2 %v996_v9 }
   0xd   :  { %278 = vmatpush.msrb.mxu3 %v976_v6  ;;  %v61_v11 = vld.sshfl [vmem:[#allocation1] sm:$0xff pattern:$0x73625140]  ;;  %569 = vmatpush.msrb.mxu0 %v996_v9 }
   0xe   :  { %799 = vmatmul.msk.f32.vlgmr.msra.gmra.mxu0 %vm63_vm0, %v61_v11  ;;  %351 = vmatpush.msrb.mxu1 %v981_v7 }
   0xf   :  { %279 = vmatpush.msrb.mxu3 %v981_v7 }
  0x10   :  { %352 = vmatpush.msrb.mxu1 %v987_v8 }
  0x11   :  { %280 = vmatpush.msrb.mxu3 %v987_v8 }
  0x12   :  { %353 = vmatpush.msrb.mxu1 %v996_v9 }
  0x13   :  { %281 = vmatpush.msrb.mxu3 %v996_v9 }
  0x14   :  { %638 = vmatpush.msra.mxu1 %v976_v6 }
  0x16   :  { %639 = vmatpush.msra.mxu1 %v981_v7 }
  0x18   :  { %640 = vmatpush.msra.mxu1 %v987_v8 }
  0x1a   :  { %641 = vmatpush.msra.mxu1 %v996_v9 }
  0x88   :  { %v139_v18 = vpop.f32.mrf.mxu1 }
  0x8b   :  { %v85_v13 = vpop.f32.mrf.mxu0 }
  0x8c   :  { %v86_v14 = vadd.f32 %v1025_v12, %v85_v13 }
  0x8e   :  { %v93_v15 = vrot.slane %v86_v14, 2  ;;  %v94_v16 = vrot.slane %v86_v14, 4  ;;  %v95_v17 = vrot.slane %v86_v14, 6  ;;  %105 = vst [vmem:[#allocation2] sm:$0x3] %v86_v14 }
  0x90   :  { %106 = vst [vmem:[#allocation2 + $0x2] sm:$0x3] %v93_v15 }
  0x91   :  { %107 = vst [vmem:[#allocation2 + $0x4] sm:$0x3] %v94_v16 }
  0x92   :  { %108 = vst [vmem:[#allocation2 + $0x6] sm:$0x3] %v95_v17 }
  0x95   :  { %v113_v19 = vld [vmem:[#allocation2] sm:$0x3] }
  0x96   :  { %v142_v20 = vadd.f32 %v139_v18, %v113_v19 }
  0x97   :  { %v187_v45 = vld [vmem:[#allocation2 + $0x2] sm:$0x3] }
  0x98   :  { %825 = vtanh.f32 %v142_v20  ;;  %v801_v22 = vmul.f32 -1.442695, %v142_v20 }
  0x9a   :  { %827 = vpow2.f32 %v801_v22 }
  0x9e   :  { %v826_v21 = vpop.eup %825 }
  0x9f   :  { %165 = vrot.lane.b32.xlu0 %v826_v21, %s916_s17 }
  0xa0   :  { %v828_v23 = vpop.eup %827 }
  0xa1   :  { %v146_v24 = vadd.f32 1.0, %v828_v23 }
  0xa3   :  { %829 = vrcp.f32 %v146_v24  ;;  %v158_v30 = vand.u32 2147483648, %v146_v24  ;;  %vm152_vm2 = vweird.f32 %v146_v24  ;;  %v156_v31 = vand.u32 2147483647, %v146_v24 }
  0xa5   :  { %v159_v33 = vor.u32 1.1754944e-38, %v158_v30  ;;  %vm157_vm4 = vcmp.eq.f32.partialorder %v156_v31, 8.507059e+37 }
  0xa9   :  { %v830_v25 = vpop.eup %829 }
  0xaa   :  { %v148_v26 = vmul.f32 %v830_v25, %v146_v24  ;;  %vm153_vm1 = vweird.f32 %v830_v25 }
  0xab   :  { %vm154_vm3 = vmor %vm152_vm2, %vm153_vm1 }
  0xac   :  { %v149_v27 = vsub.f32 1.0, %v148_v26 }
  0xae   :  { %v150_v28 = vmul.f32 %v830_v25, %v149_v27 }
  0xb0   :  { %v151_v29 = vadd.f32 %v830_v25, %v150_v28 }
  0xb2   :  { %v155_v32 = vsel %vm154_vm3, %v830_v25, %v151_v29 }
  0xb3   :  { %v160_v35 = vsel %vm157_vm4, %v159_v33, %v155_v32 }
  0xb4   :  { %v163_v37 = vmul.f32 0.0, %v160_v35 }
 0x111   :  { %v166_v34 = vpop.permute.xlu0 %165 }
 0x112   :  { %v168_v36 = vmul.f32 %v166_v34, %v160_v35 }
 0x114   :  { %170 = vrot.lane.b32.xlu0 %v168_v36, %s916_s17  ;;  %v331_v36 = vld [vmem:[#allocation2 + $0x6] sm:$0x3] }
 0x186   :  { %v171_v38 = vpop.permute.xlu0 %170 }
 0x187   :  { %v173_v39 = vadd.f32 %v171_v38, %v163_v37 }
 0x189   :  { %831 = vtanh.f32 %v173_v39 }
 0x18f   :  { %v832_v40 = vpop.eup %831 }
 0x190   :  { %176 = vrot.lane.b32.xlu1 %v832_v40, %s916_s17 }
 0x202   :  { %v177_v41 = vpop.permute.xlu1 %176 }
 0x203   :  { %v179_v42 = vmul.f32 %v177_v41, %v160_v35 }
 0x205   :  { %181 = vrot.lane.b32.xlu1 %v179_v42, %s917_s3 }
 0x277   :  { %v182_v43 = vpop.permute.xlu1 %181 }
 0x278   :  { %185 = vst.msk [vmem:[#allocation3] sm:$0x3] %vm184_vm5, %v182_v43  ;;  %802 = vmatmul.msk.f32.vlgmr.msra.gmra.mxu3 %vm118_vm6, %v182_v43 }
 0x279   :  { %494 = vmatpush.msra.mxu3 %v976_v6 }
 0x27b   :  { %495 = vmatpush.msra.mxu3 %v981_v7 }
 0x27d   :  { %496 = vmatpush.msra.mxu3 %v987_v8  ;;  %v259_v8 = vld [vmem:[#allocation2 + $0x4] sm:$0x3] }
 0x27f   :  { %v690_v44 = vld [vmem:[#allocation3] sm:$0x3]  ;;  %497 = vmatpush.msra.mxu3 %v996_v9 }
 0x280   :  { %714 = vst [vmem:[#allocation1] ss:$4 sm:$0xff] %v690_v44 }
 0x2fb   :  { %v211_v46 = vpop.f32.mrf.mxu3 }
 0x2fc   :  { %v214_v47 = vadd.f32 %v211_v46, %v187_v45 }
 0x2fe   :  { %833 = vtanh.f32 %v214_v47  ;;  %v803_v49 = vmul.f32 -1.442695, %v214_v47 }
 0x300   :  { %835 = vpow2.f32 %v803_v49 }
 0x304   :  { %v834_v48 = vpop.eup %833 }
 0x305   :  { %237 = vrot.lane.b32.xlu2 %v834_v48, %s916_s17 }
 0x306   :  { %v836_v50 = vpop.eup %835 }
 0x307   :  { %v218_v51 = vadd.f32 1.0, %v836_v50 }
 0x309   :  { %837 = vrcp.f32 %v218_v51  ;;  %v230_v57 = vand.u32 2147483648, %v218_v51  ;;  %vm224_vm8 = vweird.f32 %v218_v51  ;;  %v228_v58 = vand.u32 2147483647, %v218_v51 }
 0x30b   :  { %v231_v60 = vor.u32 1.1754944e-38, %v230_v57  ;;  %vm229_vm10 = vcmp.eq.f32.partialorder %v228_v58, 8.507059e+37 }
 0x30f   :  { %v838_v52 = vpop.eup %837 }
 0x310   :  { %v220_v53 = vmul.f32 %v838_v52, %v218_v51  ;;  %vm225_vm7 = vweird.f32 %v838_v52 }
 0x311   :  { %vm226_vm9 = vmor %vm224_vm8, %vm225_vm7 }
 0x312   :  { %v221_v54 = vsub.f32 1.0, %v220_v53 }
 0x314   :  { %v222_v55 = vmul.f32 %v838_v52, %v221_v54 }
 0x316   :  { %v223_v56 = vadd.f32 %v838_v52, %v222_v55 }
 0x318   :  { %v227_v59 = vsel %vm226_vm9, %v838_v52, %v223_v56 }
 0x319   :  { %v232_v62 = vsel %vm229_vm10, %v231_v60, %v227_v59  ;;  %v28_v59 = vld [vmem:[%s1131_s0 + $0x8] sm:$0x3]  ;;  %v29_v60 = vld [vmem:[%s1131_s0 + $0xa] sm:$0x3] }
 0x31a   :  { %v235_v0 = vmul.f32 %v232_v62, %v173_v39  ;;  %54 = vst [vmem:[#allocation1 + $0x20] ss:$4 sm:$0xff] %v28_v59 }
 0x31b   :  { %56 = vst [vmem:[#allocation1 + $0x21] ss:$4 sm:$0xff] %v29_v60 }
 0x35f   :  { %v238_v61 = vpop.permute.xlu2 %237 }
 0x360   :  { %v240_v63 = vmul.f32 %v238_v61, %v232_v62  ;;  %v30_v61 = vld [vmem:[%s1131_s0 + $0xc] sm:$0x3] }
 0x361   :  { %58 = vst [vmem:[#allocation1 + $0x22] ss:$4 sm:$0xff] %v30_v61 }
 0x362   :  { %242 = vrot.lane.b32.xlu2 %v240_v63, %s916_s17 }
 0x3bc   :  { %v243_v1 = vpop.permute.xlu2 %242 }
 0x3bd   :  { %v245_v2 = vadd.f32 %v243_v1, %v235_v0 }
 0x3bf   :  { %839 = vtanh.f32 %v245_v2 }
 0x3c5   :  { %v840_v3 = vpop.eup %839 }
 0x3c6   :  { %248 = vrot.lane.b32.xlu0 %v840_v3, %s916_s17  ;;  %v700_v3 = vld [vmem:[%s1135_s4 + $0x10] sm:$0xff] }
 0x438   :  { %v249_v4 = vpop.permute.xlu0 %248 }
 0x439   :  { %v251_v5 = vmul.f32 %v249_v4, %v232_v62  ;;  %v31_v62 = vld [vmem:[%s1131_s0 + $0xe] sm:$0x3] }
 0x43a   :  { %60 = vst [vmem:[#allocation1 + $0x23] ss:$4 sm:$0xff] %v31_v62  ;;  %v699_v4 = vld [vmem:[%s1135_s4 + $0x8] sm:$0xff] }
 0x43b   :  { %253 = vrot.lane.b32.xlu1 %v251_v5, %s917_s3  ;;  %v698_v5 = vld [vmem:[%s1135_s4] sm:$0xff] }
 0x441   :  { %v62_v63 = vld.sshfl [vmem:[#allocation1 + $0x20] sm:$0xff pattern:$0x73625140] }
 0x442   :  { %800 = vmatmul.msk.f32.gmra.mxu0 %vm63_vm0, %v62_v63  ;;  %vm772_vm0 = vcmask 58368  }
 0x4ad   :  { %v254_v6 = vpop.permute.xlu1 %253 }
 0x4ae   :  { %257 = vst.msk [vmem:[#allocation3 + $0x2] sm:$0x3] %vm184_vm5, %v254_v6  ;;  %804 = vmatmul.msk.f32.vlgmr.msrb.gmra.mxu3 %vm118_vm6, %v254_v6 }
 0x4b5   :  { %v691_v7 = vld [vmem:[#allocation3 + $0x2] sm:$0x3] }
 0x4b6   :  { %716 = vst [vmem:[#allocation1 + $0x1] ss:$4 sm:$0xff] %v691_v7 }
 0x4bf   :  { %v88_v6 = vpop.f32.mrf.mxu0 }
 0x4c0   :  { %v89_v7 = vadd.f32 %v1025_v12, %v88_v6 }
 0x4c2   :  { %109 = vst [vmem:[#allocation2 + $0x8] sm:$0x3] %v89_v7 }
 0x531   :  { %v283_v9 = vpop.f32.mrf.mxu3 }
 0x532   :  { %v286_v10 = vadd.f32 %v283_v9, %v259_v8  ;;  %v96_v8 = vrot.slane %v89_v7, 2  ;;  %v97_v9 = vrot.slane %v89_v7, 4 }
 0x534   :  { %841 = vtanh.f32 %v286_v10  ;;  %v805_v13 = vmul.f32 -1.442695, %v286_v10  ;;  %v98_v10 = vrot.slane %v89_v7, 6  ;;  %110 = vst [vmem:[#allocation2 + $0xa] sm:$0x3] %v96_v8 }
 0x535   :  { %111 = vst [vmem:[#allocation2 + $0xc] sm:$0x3] %v97_v9 }
 0x536   :  { %843 = vpow2.f32 %v805_v13  ;;  %112 = vst [vmem:[#allocation2 + $0xe] sm:$0x3] %v98_v10 }
 0x53a   :  { %v842_v11 = vpop.eup %841 }
 0x53b   :  { %309 = vrot.lane.b32.xlu2 %v842_v11, %s916_s17 }
 0x53c   :  { %v844_v14 = vpop.eup %843  ;;  %v547_v10 = vld [vmem:[#allocation2 + $0xc] sm:$0x3] }
 0x53d   :  { %v290_v15 = vadd.f32 1.0, %v844_v14 }
 0x53f   :  { %845 = vrcp.f32 %v290_v15  ;;  %v302_v21 = vand.u32 2147483648, %v290_v15  ;;  %vm296_vm12 = vweird.f32 %v290_v15  ;;  %v300_v22 = vand.u32 2147483647, %v290_v15 }
 0x541   :  { %v303_v24 = vor.u32 1.1754944e-38, %v302_v21  ;;  %vm301_vm14 = vcmp.eq.f32.partialorder %v300_v22, 8.507059e+37 }
 0x545   :  { %v846_v16 = vpop.eup %845 }
 0x546   :  { %v292_v17 = vmul.f32 %v846_v16, %v290_v15  ;;  %vm297_vm11 = vweird.f32 %v846_v16  ;;  %v403_v15 = vld [vmem:[#allocation2 + $0x8] sm:$0x3] }
 0x547   :  { %vm298_vm13 = vmor %vm296_vm12, %vm297_vm11 }
 0x548   :  { %v293_v18 = vsub.f32 1.0, %v292_v17 }
 0x54a   :  { %v294_v19 = vmul.f32 %v846_v16, %v293_v18  ;;  %v1090_v18 = vld [vmem:[%s1136_s5] ss:$0 sm:$0xff]  ;;  %s918_s5 = smov [#allocation4]  }
 0x54b   :  { %s785_s1 = sshll.u32 %s918_s5, 4  ;;  %s786_s1 = int_to_ptr.vmem [resolvable:$true] %s785_s1 }
 0x54c   :  { %v295_v20 = vadd.f32 %v846_v16, %v294_v19 }
 0x54e   :  { %v299_v23 = vsel %vm298_vm13, %v846_v16, %v295_v20 }
 0x54f   :  { %v304_v26 = vsel %vm301_vm14, %v303_v24, %v299_v23 }
 0x550   :  { %v307_v28 = vmul.f32 %v304_v26, %v245_v2  ;;  %v701_v2 = vld [vmem:[%s1135_s4 + $0x18] sm:$0xff] }
 0x551   :  { %747 = vmatpush.msrb.mxu2 %v701_v2 }
 0x553   :  { %748 = vmatpush.msrb.mxu2 %v700_v3 }
 0x555   :  { %749 = vmatpush.msrb.mxu2 %v699_v4 }
 0x557   :  { %750 = vmatpush.msrb.mxu2 %v698_v5 }
 0x595   :  { %v310_v25 = vpop.permute.xlu2 %309 }
 0x596   :  { %v312_v27 = vmul.f32 %v310_v25, %v304_v26 }
 0x598   :  { %314 = vrot.lane.b32.xlu0 %v312_v27, %s916_s17 }
 0x60a   :  { %v315_v29 = vpop.permute.xlu0 %314 }
 0x60b   :  { %v317_v30 = vadd.f32 %v315_v29, %v307_v28 }
 0x60d   :  { %847 = vtanh.f32 %v317_v30 }
 0x613   :  { %v848_v31 = vpop.eup %847 }
 0x614   :  { %320 = vrot.lane.b32.xlu1 %v848_v31, %s916_s17 }
 0x686   :  { %v321_v32 = vpop.permute.xlu1 %320 }
 0x687   :  { %v323_v33 = vmul.f32 %v321_v32, %v304_v26 }
 0x689   :  { %325 = vrot.lane.b32.xlu2 %v323_v33, %s917_s3 }
 0x6e3   :  { %v326_v34 = vpop.permute.xlu2 %325 }
 0x6e4   :  { %329 = vst.msk [vmem:[#allocation3 + $0x4] sm:$0x3] %vm184_vm5, %v326_v34  ;;  %806 = vmatmul.msk.f32.vlgmr.msrb.gmra.mxu1 %vm118_vm6, %v326_v34 }
 0x6eb   :  { %v692_v35 = vld [vmem:[#allocation3 + $0x4] sm:$0x3] }
 0x6ec   :  { %718 = vst [vmem:[#allocation1 + $0x2] ss:$4 sm:$0xff] %v692_v35 }
 0x761   :  { %v355_v37 = vpop.f32.mrf.mxu1 }
 0x762   :  { %v358_v38 = vadd.f32 %v355_v37, %v331_v36 }
 0x764   :  { %849 = vtanh.f32 %v358_v38  ;;  %v807_v40 = vmul.f32 -1.442695, %v358_v38 }
 0x766   :  { %851 = vpow2.f32 %v807_v40 }
 0x76a   :  { %v850_v39 = vpop.eup %849 }
 0x76b   :  { %381 = vrot.lane.b32.xlu0 %v850_v39, %s916_s17 }
 0x76c   :  { %v852_v41 = vpop.eup %851 }
 0x76d   :  { %v362_v42 = vadd.f32 1.0, %v852_v41 }
 0x76f   :  { %853 = vrcp.f32 %v362_v42  ;;  %v374_v48 = vand.u32 2147483648, %v362_v42  ;;  %vm368_vm1 = vweird.f32 %v362_v42  ;;  %v372_v49 = vand.u32 2147483647, %v362_v42 }
 0x771   :  { %v375_v51 = vor.u32 1.1754944e-38, %v374_v48  ;;  %vm373_vm3 = vcmp.eq.f32.partialorder %v372_v49, 8.507059e+37 }
 0x775   :  { %v854_v43 = vpop.eup %853 }
 0x776   :  { %v364_v44 = vmul.f32 %v854_v43, %v362_v42  ;;  %vm369_vm15 = vweird.f32 %v854_v43 }
 0x777   :  { %vm370_vm2 = vmor %vm368_vm1, %vm369_vm15 }
 0x778   :  { %v365_v45 = vsub.f32 1.0, %v364_v44 }
 0x77a   :  { %v366_v46 = vmul.f32 %v854_v43, %v365_v45 }
 0x77c   :  { %v367_v47 = vadd.f32 %v854_v43, %v366_v46 }
 0x77e   :  { %v371_v50 = vsel %vm370_vm2, %v854_v43, %v367_v47  ;;  %v475_v47 = vld [vmem:[#allocation2 + $0xa] sm:$0x3] }
 0x77f   :  { %v376_v53 = vsel %vm373_vm3, %v375_v51, %v371_v50 }
 0x780   :  { %v379_v55 = vmul.f32 %v376_v53, %v317_v30 }
 0x7dd   :  { %v382_v52 = vpop.permute.xlu0 %381 }
 0x7de   :  { %v384_v54 = vmul.f32 %v382_v52, %v376_v53 }
 0x7e0   :  { %386 = vrot.lane.b32.xlu1 %v384_v54, %s916_s17 }
 0x852   :  { %v387_v56 = vpop.permute.xlu1 %386 }
 0x853   :  { %v1052_v57 = vadd.f32 %v387_v56, %v379_v55 }
 0x855   :  { %855 = vtanh.f32 %v1052_v57 }
 0x85b   :  { %v856_v58 = vpop.eup %855 }
 0x85c   :  { %392 = vrot.lane.b32.xlu2 %v856_v58, %s916_s17 }
 0x8b6   :  { %v393_v0 = vpop.permute.xlu2 %392 }
 0x8b7   :  { %v395_v1 = vmul.f32 %v393_v0, %v376_v53 }
 0x8b9   :  { %397 = vrot.lane.b32.xlu0 %v395_v1, %s917_s3 }
 0x92b   :  { %v398_v11 = vpop.permute.xlu0 %397 }
 0x92c   :  { %401 = vst.msk [vmem:[#allocation3 + $0x6] sm:$0x3] %vm184_vm5, %v398_v11  ;;  %808 = vmatmul.msk.f32.vlgmr.msra.gmra.mxu2 %vm118_vm6, %v398_v11 }
 0x933   :  { %v693_v13 = vld [vmem:[#allocation3 + $0x6] sm:$0x3] }
 0x934   :  { %720 = vst [vmem:[#allocation1 + $0x3] ss:$4 sm:$0xff] %v693_v13 }
 0x93b   :  { %v729_v14 = vld.sshfl [vmem:[#allocation1] sm:$0xff pattern:$0x73625140] }
 0x93c   :  { %816 = vmatmul.msk.f32.vlgmr.msrb.gmra.mxu2 %vm118_vm6, %v729_v14 }
 0x9af   :  { %v427_v16 = vpop.f32.mrf.mxu2 }
 0x9b0   :  { %v430_v12 = vadd.f32 %v427_v16, %v403_v15 }
 0x9b2   :  { %857 = vtanh.f32 %v430_v12  ;;  %v809_v24 = vmul.f32 -1.442695, %v430_v12 }
 0x9b4   :  { %859 = vpow2.f32 %v809_v24 }
 0x9b8   :  { %v858_v17 = vpop.eup %857 }
 0x9b9   :  { %453 = vrot.lane.b32.xlu1 %v858_v17, %s916_s17 }
 0x9ba   :  { %v860_v25 = vpop.eup %859 }
 0x9bb   :  { %v434_v26 = vadd.f32 1.0, %v860_v25 }
 0x9bd   :  { %861 = vrcp.f32 %v434_v26  ;;  %v446_v32 = vand.u32 2147483648, %v434_v26  ;;  %vm440_vm7 = vweird.f32 %v434_v26  ;;  %v444_v33 = vand.u32 2147483647, %v434_v26 }
 0x9bf   :  { %v752_v19 = vpop.f32.mrf.mxu2  ;;  %v447_v35 = vor.u32 1.1754944e-38, %v446_v32  ;;  %vm445_vm9 = vcmp.eq.f32.partialorder %v444_v33, 8.507059e+37 }
 0x9c0   :  { %v753_v20 = vadd.f32 %v1090_v18, %v752_v19 }
 0x9c2   :  { %v760_v21 = vrot.slane %v753_v20, 2  ;;  %v761_v22 = vrot.slane %v753_v20, 4  ;;  %v762_v23 = vrot.slane %v753_v20, 6  ;;  %773 = vst.msk [vmem:[#allocation4] sm:$0x3] %vm772_vm0, %v753_v20 }
 0x9c3   :  { %v862_v27 = vpop.eup %861 }
 0x9c4   :  { %774 = vst.msk [vmem:[#allocation4 + $0x2] sm:$0x3] %vm772_vm0, %v760_v21  ;;  %v436_v28 = vmul.f32 %v862_v27, %v434_v26  ;;  %vm441_vm4 = vweird.f32 %v862_v27 }
 0x9c5   :  { %775 = vst.msk [vmem:[#allocation4 + $0x4] sm:$0x3] %vm772_vm0, %v761_v22  ;;  %vm442_vm8 = vmor %vm440_vm7, %vm441_vm4 }
 0x9c6   :  { %776 = vst.msk [vmem:[#allocation4 + $0x6] sm:$0x3] %vm772_vm0, %v762_v23  ;;  %v437_v29 = vsub.f32 1.0, %v436_v28 }
 0x9c8   :  { %v438_v30 = vmul.f32 %v862_v27, %v437_v29 }
 0x9ca   :  { %v439_v31 = vadd.f32 %v862_v27, %v438_v30 }
 0x9cc   :  { %v443_v34 = vsel %vm442_vm8, %v862_v27, %v439_v31 }
 0x9cd   :  { %v448_v37 = vsel %vm445_vm9, %v447_v35, %v443_v34 }
 0x9ce   :  { %v451_v39 = vmul.f32 %v448_v37, %v1052_v57 }
 0xa2b   :  { %v454_v36 = vpop.permute.xlu1 %453 }
 0xa2c   :  { %v456_v38 = vmul.f32 %v454_v36, %v448_v37 }
 0xa2e   :  { %458 = vrot.lane.b32.xlu2 %v456_v38, %s916_s17  ;;  %v619_v38 = vld [vmem:[#allocation2 + $0xe] sm:$0x3] }
 0xa88   :  { %v459_v40 = vpop.permute.xlu2 %458 }
 0xa89   :  { %v461_v41 = vadd.f32 %v459_v40, %v451_v39 }
 0xa8b   :  { %863 = vtanh.f32 %v461_v41 }
 0xa91   :  { %v864_v42 = vpop.eup %863 }
 0xa92   :  { %464 = vrot.lane.b32.xlu0 %v864_v42, %s916_s17 }
 0xb04   :  { %v465_v43 = vpop.permute.xlu0 %464 }
 0xb05   :  { %v467_v44 = vmul.f32 %v465_v43, %v448_v37 }
 0xb07   :  { %469 = vrot.lane.b32.xlu1 %v467_v44, %s917_s3 }
 0xb79   :  { %v470_v45 = vpop.permute.xlu1 %469 }
 0xb7a   :  { %473 = vst.msk [vmem:[#allocation3 + $0x8] sm:$0x3] %vm184_vm5, %v470_v45  ;;  %810 = vmatmul.msk.f32.vlgmr.msra.gmra.mxu3 %vm118_vm6, %v470_v45 }
 0xb81   :  { %v694_v46 = vld [vmem:[#allocation3 + $0x8] sm:$0x3] }
 0xb82   :  { %722 = vst [vmem:[#allocation1 + $0x20] ss:$4 sm:$0xff] %v694_v46 }
 0xbfd   :  { %v499_v48 = vpop.f32.mrf.mxu3 }
 0xbfe   :  { %v502_v49 = vadd.f32 %v499_v48, %v475_v47 }
 0xc00   :  { %865 = vtanh.f32 %v502_v49  ;;  %v811_v51 = vmul.f32 -1.442695, %v502_v49 }
 0xc02   :  { %867 = vpow2.f32 %v811_v51 }
 0xc06   :  { %v866_v50 = vpop.eup %865 }
 0xc07   :  { %525 = vrot.lane.b32.xlu2 %v866_v50, %s916_s17 }
 0xc08   :  { %v868_v52 = vpop.eup %867 }
 0xc09   :  { %v506_v53 = vadd.f32 1.0, %v868_v52 }
 0xc0b   :  { %869 = vrcp.f32 %v506_v53  ;;  %v518_v59 = vand.u32 2147483648, %v506_v53  ;;  %vm512_vm11 = vweird.f32 %v506_v53  ;;  %v516_v60 = vand.u32 2147483647, %v506_v53 }
 0xc0d   :  { %v519_v62 = vor.u32 1.1754944e-38, %v518_v59  ;;  %vm517_vm13 = vcmp.eq.f32.partialorder %v516_v60, 8.507059e+37 }
 0xc11   :  { %v870_v54 = vpop.eup %869 }
 0xc12   :  { %v508_v55 = vmul.f32 %v870_v54, %v506_v53  ;;  %vm513_vm10 = vweird.f32 %v870_v54 }
 0xc13   :  { %vm514_vm12 = vmor %vm512_vm11, %vm513_vm10 }
 0xc14   :  { %v509_v56 = vsub.f32 1.0, %v508_v55 }
 0xc16   :  { %v510_v57 = vmul.f32 %v870_v54, %v509_v56 }
 0xc18   :  { %v511_v58 = vadd.f32 %v870_v54, %v510_v57 }
 0xc1a   :  { %v515_v61 = vsel %vm514_vm12, %v870_v54, %v511_v58 }
 0xc1b   :  { %v520_v0 = vsel %vm517_vm13, %v519_v62, %v515_v61 }
 0xc1c   :  { %v523_v2 = vmul.f32 %v520_v0, %v461_v41 }
 0xc61   :  { %v526_v63 = vpop.permute.xlu2 %525 }
 0xc62   :  { %v528_v1 = vmul.f32 %v526_v63, %v520_v0 }
 0xc64   :  { %530 = vrot.lane.b32.xlu0 %v528_v1, %s916_s17 }
 0xcd6   :  { %v531_v3 = vpop.permute.xlu0 %530 }
 0xcd7   :  { %v533_v4 = vadd.f32 %v531_v3, %v523_v2 }
 0xcd9   :  { %871 = vtanh.f32 %v533_v4 }
 0xcdf   :  { %v872_v5 = vpop.eup %871 }
 0xce0   :  { %536 = vrot.lane.b32.xlu1 %v872_v5, %s916_s17 }
 0xd52   :  { %v537_v6 = vpop.permute.xlu1 %536 }
 0xd53   :  { %v539_v7 = vmul.f32 %v537_v6, %v520_v0 }
 0xd55   :  { %541 = vrot.lane.b32.xlu2 %v539_v7, %s917_s3 }
 0xdaf   :  { %v542_v8 = vpop.permute.xlu2 %541 }
 0xdb0   :  { %545 = vst.msk [vmem:[#allocation3 + $0xa] sm:$0x3] %vm184_vm5, %v542_v8  ;;  %812 = vmatmul.msk.f32.vlgmr.msrb.gmra.mxu0 %vm118_vm6, %v542_v8 }
 0xdb7   :  { %v695_v9 = vld [vmem:[#allocation3 + $0xa] sm:$0x3] }
 0xdb8   :  { %724 = vst [vmem:[#allocation1 + $0x21] ss:$4 sm:$0xff] %v695_v9 }
 0xe2d   :  { %v571_v11 = vpop.f32.mrf.mxu0 }
 0xe2e   :  { %v574_v13 = vadd.f32 %v571_v11, %v547_v10 }
 0xe30   :  { %873 = vtanh.f32 %v574_v13  ;;  %v813_v15 = vmul.f32 -1.442695, %v574_v13 }
 0xe32   :  { %875 = vpow2.f32 %v813_v15 }
 0xe36   :  { %v874_v14 = vpop.eup %873 }
 0xe37   :  { %597 = vrot.lane.b32.xlu0 %v874_v14, %s916_s17 }
 0xe38   :  { %v876_v16 = vpop.eup %875 }
 0xe39   :  { %v578_v12 = vadd.f32 1.0, %v876_v16 }
 0xe3b   :  { %877 = vrcp.f32 %v578_v12  ;;  %v590_v23 = vand.u32 2147483648, %v578_v12  ;;  %vm584_vm15 = vweird.f32 %v578_v12  ;;  %v588_v24 = vand.u32 2147483647, %v578_v12 }
 0xe3d   :  { %v591_v26 = vor.u32 1.1754944e-38, %v590_v23  ;;  %vm589_vm2 = vcmp.eq.f32.partialorder %v588_v24, 8.507059e+37 }
 0xe41   :  { %v878_v17 = vpop.eup %877 }
 0xe42   :  { %v580_v19 = vmul.f32 %v878_v17, %v578_v12  ;;  %vm585_vm14 = vweird.f32 %v878_v17 }
 0xe43   :  { %vm586_vm1 = vmor %vm584_vm15, %vm585_vm14 }
 0xe44   :  { %v581_v20 = vsub.f32 1.0, %v580_v19 }
 0xe46   :  { %v582_v21 = vmul.f32 %v878_v17, %v581_v20 }
 0xe48   :  { %v583_v22 = vadd.f32 %v878_v17, %v582_v21 }
 0xe4a   :  { %v587_v25 = vsel %vm586_vm1, %v878_v17, %v583_v22 }
 0xe4b   :  { %v592_v28 = vsel %vm589_vm2, %v591_v26, %v587_v25 }
 0xe4c   :  { %v595_v30 = vmul.f32 %v592_v28, %v533_v4 }
 0xea9   :  { %v598_v27 = vpop.permute.xlu0 %597 }
 0xeaa   :  { %v600_v29 = vmul.f32 %v598_v27, %v592_v28 }
 0xeac   :  { %602 = vrot.lane.b32.xlu1 %v600_v29, %s916_s17 }
 0xf1e   :  { %v603_v31 = vpop.permute.xlu1 %602 }
 0xf1f   :  { %v605_v32 = vadd.f32 %v603_v31, %v595_v30 }
 0xf21   :  { %879 = vtanh.f32 %v605_v32 }
 0xf27   :  { %v880_v33 = vpop.eup %879 }
 0xf28   :  { %608 = vrot.lane.b32.xlu2 %v880_v33, %s916_s17 }
 0xf82   :  { %v609_v34 = vpop.permute.xlu2 %608 }
 0xf83   :  { %v611_v35 = vmul.f32 %v609_v34, %v592_v28 }
 0xf85   :  { %613 = vrot.lane.b32.xlu0 %v611_v35, %s917_s3 }
 0xff7   :  { %v614_v36 = vpop.permute.xlu0 %613 }
 0xff8   :  { %617 = vst.msk [vmem:[#allocation3 + $0xc] sm:$0x3] %vm184_vm5, %v614_v36  ;;  %814 = vmatmul.msk.f32.vlgmr.msra.gmra.mxu1 %vm118_vm6, %v614_v36 }
 0xfff   :  { %v696_v37 = vld [vmem:[#allocation3 + $0xc] sm:$0x3] }
0x1000   :  { %726 = vst [vmem:[#allocation1 + $0x22] ss:$4 sm:$0xff] %v696_v37 }
0x1075   :  { %v643_v39 = vpop.f32.mrf.mxu1 }
0x1076   :  { %v646_v40 = vadd.f32 %v643_v39, %v619_v38 }
0x1078   :  { %881 = vtanh.f32 %v646_v40  ;;  %v815_v42 = vmul.f32 -1.442695, %v646_v40 }
0x107a   :  { %883 = vpow2.f32 %v815_v42 }
0x107e   :  { %v882_v41 = vpop.eup %881 }
0x107f   :  { %669 = vrot.lane.b32.xlu1 %v882_v41, %s916_s17 }
0x1080   :  { %v884_v43 = vpop.eup %883 }
0x1081   :  { %v650_v44 = vadd.f32 1.0, %v884_v43 }
0x1083   :  { %885 = vrcp.f32 %v650_v44  ;;  %v662_v50 = vand.u32 2147483648, %v650_v44  ;;  %vm656_vm4 = vweird.f32 %v650_v44  ;;  %v660_v51 = vand.u32 2147483647, %v650_v44 }
0x1085   :  { %v663_v53 = vor.u32 1.1754944e-38, %v662_v50  ;;  %vm661_vm8 = vcmp.eq.f32.partialorder %v660_v51, 8.507059e+37 }
0x1089   :  { %v886_v45 = vpop.eup %885 }
0x108a   :  { %v652_v46 = vmul.f32 %v886_v45, %v650_v44  ;;  %vm657_vm3 = vweird.f32 %v886_v45 }
0x108b   :  { %vm658_vm7 = vmor %vm656_vm4, %vm657_vm3 }
0x108c   :  { %v653_v47 = vsub.f32 1.0, %v652_v46 }
0x108e   :  { %v654_v48 = vmul.f32 %v886_v45, %v653_v47 }
0x1090   :  { %v655_v49 = vadd.f32 %v886_v45, %v654_v48 }
0x1092   :  { %v659_v52 = vsel %vm658_vm7, %v886_v45, %v655_v49 }
0x1093   :  { %v664_v55 = vsel %vm661_vm8, %v663_v53, %v659_v52 }
0x1094   :  { %v667_v57 = vmul.f32 %v664_v55, %v605_v32 }
0x10f1   :  { %v670_v54 = vpop.permute.xlu1 %669 }
0x10f2   :  { %v672_v56 = vmul.f32 %v670_v54, %v664_v55 }
0x10f4   :  { %674 = vrot.lane.b32.xlu2 %v672_v56, %s916_s17 }
0x114e   :  { %v675_v58 = vpop.permute.xlu2 %674 }
0x114f   :  { %v677_v59 = vadd.f32 %v675_v58, %v667_v57 }
0x1151   :  { %887 = vtanh.f32 %v677_v59 }
0x1157   :  { %v888_v60 = vpop.eup %887 }
0x1158   :  { %680 = vrot.lane.b32.xlu0 %v888_v60, %s916_s17 }
0x11ca   :  { %v681_v61 = vpop.permute.xlu0 %680 }
0x11cb   :  { %v683_v62 = vmul.f32 %v681_v61, %v664_v55 }
0x11cd   :  { %685 = vrot.lane.b32.xlu1 %v683_v62, %s917_s3 }
0x123f   :  { %v686_v63 = vpop.permute.xlu1 %685 }
0x1240   :  { %689 = vst.msk [vmem:[#allocation3 + $0xe] sm:$0x3] %vm184_vm5, %v686_v63 }
0x1247   :  { %v697_v0 = vld [vmem:[#allocation3 + $0xe] sm:$0x3] }
0x1248   :  { %728 = vst [vmem:[#allocation1 + $0x23] ss:$4 sm:$0xff] %v697_v0 }
0x124f   :  { %v730_v1 = vld.sshfl [vmem:[#allocation1 + $0x20] sm:$0xff pattern:$0x73625140] }
0x1250   :  { %817 = vmatmul.msk.f32.gmra.mxu2 %vm118_vm6, %v730_v1 }
0x12d3   :  { %v755_v2 = vpop.f32.mrf.mxu2 }
0x12d4   :  { %v756_v3 = vadd.f32 %v1090_v18, %v755_v2 }
0x12d6   :  { %v763_v4 = vrot.slane %v756_v3, 2  ;;  %v764_v5 = vrot.slane %v756_v3, 4  ;;  %v765_v6 = vrot.slane %v756_v3, 6  ;;  %777 = vst.msk [vmem:[#allocation4 + $0x8] sm:$0x3] %vm772_vm0, %v756_v3 }
0x12d8   :  { %778 = vst.msk [vmem:[#allocation4 + $0xa] sm:$0x3] %vm772_vm0, %v763_v4 }
0x12d9   :  { %779 = vst.msk [vmem:[#allocation4 + $0xc] sm:$0x3] %vm772_vm0, %v764_v5 }
0x12da   :  { %780 = vst.msk [vmem:[#allocation4 + $0xe] sm:$0x3] %vm772_vm0, %v765_v6 }
0x12db   :  { %793 = dma.vmem_to_hbm [thread:$0]  %s786_s1, 256, %s788_s12, [#allocation5], %s916_s17, %s916_s17, %s919_s13  }
0x12dc   :  { %913 = dma.done.wait [#allocation5], 256  }
0x12dd   :  { %914 = vsyncadd [#allocation5], 4294967040 }
0x12de   :  { %798 = vsyncpa [#allocation5], 1 }

</bundles_post_ra>
